<compile_context>
chip_gen: v7x
topology: tpu7x:2x2x1
jax: 0.10.0
libtpu: 0.0.40
codegen_flags: <defaults>
</compile_context>

<pallas_src>
import functools

import jax
import jax.numpy as jnp
from jax import lax
from jax.experimental import pallas as pl
from jax.experimental.pallas import tpu as pltpu


def _round_up(x, m):
    return ((x + m - 1) // m) * m


def _pick_time_tile(T, Bp, fcp, fxp, c_sz, x_sz, w_sz):
    """Pick the largest time tile that fits the current generation's VMEM budget and
    return (tile, vmem_limit_bytes) so the scoped limit matches what we actually use."""
    try:
        vmem_cap = int(pltpu.get_tpu_info().vmem_capacity_bytes)
    except Exception:  # pragma: no cover - conservative fallback (v7x physical VMEM)
        vmem_cap = 64 * 1024 * 1024
    budget = int(0.45 * vmem_cap)

    # Bytes resident per time step of one tile.
    per_t = (2 * Bp * fcp * c_sz        # C tile (double-buffered by the BlockSpec pipeline)
             + 2 * Bp * fxp * x_sz      # manual X double buffer (shifted window)
             + Bp * fxp * x_sz          # xs value loaded from the buffer
             + Bp * fcp * 4             # xt (f32 Linear output)
             + 2 * Bp * fcp * c_sz      # xt cast back to native + C value
             + 2 * Bp * Bp * 4          # z and exp(z - zmax)
             + 8 * Bp * 4)              # small [tT, Bp] f32 temporaries
    fixed = 2 * fxp * fcp * w_sz + 4 * fcp * 4 + (2 << 20)   # weights + slack

    tT = (budget - fixed) // max(per_t, 1)
    tT = max(8, min(int(tT), 2048, _round_up(T, 8)))
    tT = (tT // 8) * 8

    working_set = fixed + per_t * tT
    vmem_limit = int(min(0.7 * vmem_cap, 1.5 * working_set + (4 << 20)))
    vmem_limit = max(vmem_limit, 32 << 20)          # never below Mosaic's default
    vmem_limit = min(vmem_limit, vmem_cap)
    return int(tT), int(vmem_limit)


def _fused_infonce_kernel(tau_ref, c_ref, x_hbm, w_ref, b_ref, o_ref,
                          xbuf, sem, acc_ref, *, T, tT, B, Bp, fcp, fxp, n_tiles):
    """One (tau, time-tile) grid step of the fused multi-tau InfoNCE loss.

    tau_ref : SMEM [n_tau] int32        prefetched time shifts
    c_ref   : [tT, Bp, fcp]             context tile (time-major)
    x_hbm   : [T_pad + max_tau, Bp, fxp] raw HBM ref (manual shifted-window DMA)
    w_ref   : [1, fxp, fcp]             this tau's Linear weight, pre-transposed
    b_ref   : [1, 1, fcp]               this tau's Linear bias
    o_ref   : [1, 1, 1]                 per-tau scalar loss
    xbuf    : VMEM [2, tT, Bp, fxp]     double-buffered shifted X window
    sem     : DMA semaphores [2]
    acc_ref : VMEM [1, 1] f32           running sum of (Zdiag - LSE) over valid entries
    """
    k = pl.program_id(0)                 # tau index   ("parallel")
    j = pl.program_id(1)                 # time tile   ("arbitrary", sequential per tau)
    t = tau_ref[k]

    def x_window(jj, slot):
        # DMA descriptor for X times [jj*tT + t, jj*tT + t + tT) into buffer `slot`.
        return pltpu.make_async_copy(
            x_hbm.at[pl.ds(jj * tT + t, tT)], xbuf.at[slot], sem.at[slot])

    slot = j & 1

    @pl.when(j == 0)
    def _prime():
        acc_ref[...] = jnp.zeros_like(acc_ref)
        x_window(0, 0).start()

    # Wait for this step's window (started at step j-1, or just above for j == 0).
    x_window(j, slot).wait()

    # Prefetch the next window of this tau while we compute on the current one.
    @pl.when(j + 1 < n_tiles)
    def _prefetch():
        x_window(j + 1, 1 - slot).start()

    # ---- Linear transform: one lane/sublane-dense MXU matmul (M = tT*Bp). ----
    xs = xbuf[slot]                                   # [tT, Bp, fxp] native dtype
    x2 = xs.reshape(tT * Bp, fxp)                     # no-op relayout (Bp % 8 == 0)
    xt = jnp.dot(x2, w_ref[0], preferred_element_type=jnp.float32)
    xt = xt + b_ref[0].astype(jnp.float32)            # [tT*Bp, fcp] f32

    c = c_ref[...]                                    # [tT, Bp, fcp]
    xt3 = xt.reshape(tT, Bp, fcp).astype(c.dtype)

    # ---- Batch-vs-batch similarities: time-batched MXU matmul. ----
    z = jnp.einsum("sic,sjc->sij", c, xt3,
                   preferred_element_type=jnp.float32)          # [tT, Bp, Bp] f32

    # Positive-pair logits = diagonal of z (consistent with the MXU accumulation).
    eye = (lax.broadcasted_iota(jnp.int32, (Bp, Bp), 0) ==
           lax.broadcasted_iota(jnp.int32, (Bp, Bp), 1))
    zdiag = jnp.sum(jnp.where(eye[None, :, :], z, 0.0), axis=2)  # [tT, Bp]

    # Padded negative-batch columns must NOT leak into the log-sum-exp.
    if Bp > B:
        col_ok = lax.broadcasted_iota(jnp.int32, (1, 1, Bp), 2) < B
        z = jnp.where(col_ok, z, jnp.float32(-1e30))

    # Numerically stable log-sum-exp over the negatives axis, in f32 (VPU/EUP).
    zmax = jnp.max(z, axis=2, keepdims=True)                     # [tT, Bp, 1]
    lse = jnp.log(jnp.sum(jnp.exp(z - zmax), axis=2)) + zmax[:, :, 0]

    # Validity: global time s < T - t  (tau shift + time zero-padding) and real batch row.
    s_idx = j * tT + lax.broadcasted_iota(jnp.int32, (tT, Bp), 0)
    valid = s_idx < (T - t)
    if Bp > B:
        valid = valid & (lax.broadcasted_iota(jnp.int32, (tT, Bp), 1) < B)

    acc_ref[...] = acc_ref[...] + jnp.sum(jnp.where(valid, zdiag - lse, 0.0))

    @pl.when(j == n_tiles - 1)
    def _finalize():
        denom = (B * (T - t)).astype(jnp.float32)
        o_ref[0] = acc_ref[...] / denom

    # TODO(synk): normalize=True branch of the reference uses an undefined global EPS;
    #             only the default normalize=False path is implemented.


def multi_tau_infonce(C, X, Wt_stack, b_stack, tau, max_time_tile=None):
    """Fused InfoNCE losses for all taus in one pallas_call.

    C        : [B, T, fc]
    X        : [B, T, fx]
    Wt_stack : [n_tau, fx, fc]   per-tau Linear weights, pre-transposed
    b_stack  : [n_tau, 1, fc]    per-tau Linear biases
    tau      : tuple of python ints, each 0 < t < T
    returns  : [n_tau] float32 losses
    """
    B, T, fc = C.shape
    _, _, fx = X.shape
    n_tau = len(tau)
    assert all(0 < int(t) < T for t in tau), "each tau must satisfy 0 < tau < T"
    max_tau = max(int(t) for t in tau)

    # Hardware-friendly padded sizes.
    Bp = _round_up(B, 8)
    fcp = _round_up(fc, 128)
    fxp = _round_up(fx, 128)

    c_sz = jnp.dtype(C.dtype).itemsize
    x_sz = jnp.dtype(X.dtype).itemsize
    w_sz = jnp.dtype(Wt_stack.dtype).itemsize

    tT, vmem_limit = _pick_time_tile(T, Bp, fcp, fxp, c_sz, x_sz, w_sz)
    if max_time_tile is not None:                 # test hook: force multi-tile path
        tT = min(tT, max(8, _round_up(int(max_time_tile), 8)))
    T_pad = _round_up(T, tT)
    n_tiles = T_pad // tT
    Tx = T_pad + max_tau                          # X windows never run out of bounds

    # Time-major, zero-padded layout.  Feature padding is inert; padded batch rows /
    # columns and padded time steps are masked inside the kernel.
    Cq = jnp.transpose(C, (1, 0, 2))
    Xq = jnp.transpose(X, (1, 0, 2))
    Cq = jnp.pad(Cq, ((0, T_pad - T), (0, Bp - B), (0, fcp - fc)))
    Xq = jnp.pad(Xq, ((0, Tx - T), (0, Bp - B), (0, fxp - fx)))
    Wp = jnp.pad(Wt_stack, ((0, 0), (0, fxp - fx), (0, fcp - fc)))
    bp = jnp.pad(b_stack, ((0, 0), (0, 0), (0, fcp - fc)))

    tau_arr = jnp.asarray([int(t) for t in tau], dtype=jnp.int32)

    grid_spec = pltpu.PrefetchScalarGridSpec(
        num_scalar_prefetch=1,
        grid=(n_tau, n_tiles),
        in_specs=[
            pl.BlockSpec((tT, Bp, fcp), lambda k, j, taus: (j, 0, 0)),   # C tile
            pl.BlockSpec(memory_space=pl.ANY),                           # X (manual DMA)
            pl.BlockSpec((1, fxp, fcp), lambda k, j, taus: (k, 0, 0)),   # per-tau W^T
            pl.BlockSpec((1, 1, fcp), lambda k, j, taus: (k, 0, 0)),     # per-tau bias
        ],
        out_specs=pl.BlockSpec((1, 1, 1), lambda k, j, taus: (k, 0, 0)),
        scratch_shapes=[
            pltpu.VMEM((2, tT, Bp, fxp), X.dtype),   # double-buffered shifted X window
            pltpu.SemaphoreType.DMA((2,)),
            pltpu.VMEM((1, 1), jnp.float32),         # running-sum accumulator
        ],
    )

    # Advisory cost estimate for XLA's scheduler (padded work).
    flops = 0
    trans = 0
    for t in tau:
        Te = T - int(t)
        flops += 2 * Bp * Te * fxp * fcp + 2 * Bp * Bp * Te * fcp
        trans += Bp * Bp * Te + Bp * Te
    bytes_accessed = (n_tau * Cq.size * Cq.dtype.itemsize
                      + n_tau * T_pad * Bp * fxp * x_sz
                      + Wp.size * Wp.dtype.itemsize
                      + bp.size * bp.dtype.itemsize
                      + n_tau * 8)

    out = pl.pallas_call(
        functools.partial(_fused_infonce_kernel, T=T, tT=tT, B=B, Bp=Bp,
                          fcp=fcp, fxp=fxp, n_tiles=n_tiles),
        grid_spec=grid_spec,
        out_shape=jax.ShapeDtypeStruct((n_tau, 1, 1), jnp.float32),
        compiler_params=pltpu.CompilerParams(
            dimension_semantics=("parallel", "arbitrary"),
            vmem_limit_bytes=int(vmem_limit)),
        cost_estimate=pl.CostEstimate(flops=int(flops),
                                      transcendentals=int(trans),
                                      bytes_accessed=int(bytes_accessed)),
    )(tau_arr, Cq, Xq, Wp, bp)

    return out[:, 0, 0]


def batch_time_infonce_loss(C, X, params, tau, max_time_tile=None):
    """Equivalent of batch_time_InfoNCE_loss.forward: list of scalar losses, one per tau.

    params : list of (W, b) with W: [fc, fx] (torch Linear weight), b: [fc]
    """
    Wt_stack = jnp.stack([jnp.transpose(W) for (W, _) in params])   # [n_tau, fx, fc]
    b_stack = jnp.stack([b.reshape(1, -1) for (_, b) in params])    # [n_tau, 1, fc]
    losses = multi_tau_infonce(C, X, Wt_stack, b_stack,
                               tuple(int(t) for t in tau), max_time_tile=max_time_tile)
    return [losses[i] for i in range(len(tau))]


def _reference_loss(C, X, W, b):
    """Pure-JAX reference of multi_batch_InfoNCE_loss for sanity checking."""
    Xt = jnp.einsum("btk,ck->btc", X, W) + b                        # Linear
    Z = jnp.sum(C[:, None, :, :] * Xt[None, :, :, :], axis=-1)      # [B, B, T]
    Zmax = jnp.max(Z, axis=1, keepdims=True)
    Zdiag = jnp.diagonal(Z, axis1=0, axis2=1).T                     # [B, T]
    out = Zdiag - (jnp.log(jnp.sum(jnp.exp(Z - Zmax), axis=1)) + Zmax[:, 0, :])
    return jnp.mean(out)


def _make_case(key, B, T, fc, fx, tau):
    kC, kX, kP = jax.random.split(key, 3)
    C = jax.random.normal(kC, (B, T, fc), dtype=jnp.float32)
    X = jax.random.normal(kX, (B, T, fx), dtype=jnp.float32)
    params = []
    bound = 1.0 / (fx ** 0.5)
    for i, _ in enumerate(tau):
        kw, kb = jax.random.split(jax.random.fold_in(kP, i))
        W = jax.random.uniform(kw, (fc, fx), jnp.float32, -bound, bound)
        b = jax.random.uniform(kb, (fc,), jnp.float32, -bound, bound)
        params.append((W, b))
    return C, X, params


if __name__ == "__main__":
    # Case 1: nominal small shapes (batch=2, T=8, context_size=32, encoding_size=32).
    B, T, fc, fx = 2, 8, 32, 32
    tau = [1, 2]
    C, X, params = _make_case(jax.random.PRNGKey(0), B, T, fc, fx, tau)
    losses = jax.block_until_ready(batch_time_infonce_loss(C, X, params, tau))
    for loss, (W, b), t in zip(losses, params, tau):
        ref = _reference_loss(C[:, :-t], X[:, t:], W, b)
        assert jnp.allclose(loss, ref, rtol=1e-3, atol=1e-3), (float(loss), float(ref))

    # Case 2: exercises multi-tile time accumulation + DMA prefetch chain, odd batch
    # padding (B=3 -> 8) with -inf masking of padded negatives, and non-128 features.
    B, T, fc, fx = 3, 20, 48, 24
    tau = [1, 3]
    C, X, params = _make_case(jax.random.PRNGKey(1), B, T, fc, fx, tau)
    losses = jax.block_until_ready(
        batch_time_infonce_loss(C, X, params, tau, max_time_tile=8))
    for loss, (W, b), t in zip(losses, params, tau):
        ref = _reference_loss(C[:, :-t], X[:, t:], W, b)
        assert jnp.allclose(loss, ref, rtol=1e-3, atol=1e-3), (float(loss), float(ref))

    print("KERNEL_OK")
</pallas_src>

<mosaic_0001>
module attributes {stable_mosaic.version = 11 : i64} {
  func.func @_fused_infonce_kernel(%arg0: i32, %arg1: i32, %arg2: memref<2xi32, #tpu.memory_space<smem>>, %arg3: memref<8x8x128xf32, #tpu.memory_space<vmem>>, %arg4: memref<10x8x128xf32, #tpu.memory_space<any>>, %arg5: memref<1x128x128xf32, #tpu.memory_space<vmem>>, %arg6: memref<1x1x128xf32, #tpu.memory_space<vmem>>, %arg7: memref<1x1x1xf32, #tpu.memory_space<vmem>>, %arg8: memref<2x8x8x128xf32, #tpu.memory_space<vmem>>, %arg9: memref<2x!tpu.dma_semaphore, #tpu.memory_space<semaphore_mem>>, %arg10: memref<1x1xf32, #tpu.memory_space<vmem>>) attributes {dimension_semantics = [#tpu.dimension_semantics<parallel>, #tpu.dimension_semantics<arbitrary>], iteration_bounds = array<i64: 2, 1>, scalar_prefetch = 1 : i64, scratch_operands = 3 : i64, tpu.core_type = #tpu.core_type<tc>, window_params = [{transform_indices = @transform_0, window_bounds = array<i64: 8, 8, 128>}, {}, {transform_indices = @transform_2, window_bounds = array<i64: 1, 128, 128>}, {transform_indices = @transform_3, window_bounds = array<i64: 1, 1, 128>}, {transform_indices = @transform_4, window_bounds = array<i64: 1, 1, 1>}]} {
    %0 = arith.index_cast %arg0 : i32 to index
    %1 = memref.load %arg2[%0] : memref<2xi32, #tpu.memory_space<smem>>
    %c1_i32 = arith.constant 1 : i32
    %2 = arith.andi %arg1, %c1_i32 : i32
    %c0_i32 = arith.constant 0 : i32
    %3 = arith.cmpi eq, %arg1, %c0_i32 : i32
    %4 = arith.extui %3 : i1 to i32
    %c0_i32_0 = arith.constant 0 : i32
    %5 = arith.cmpi ne, %4, %c0_i32_0 : i32
    scf.if %5 {
      %cst_37 = arith.constant 0.000000e+00 : f32
      %81 = vector.broadcast %cst_37 : f32 to vector<1x1xf32>
      %c0_38 = arith.constant 0 : index
      %c0_39 = arith.constant 0 : index
      %82 = vector.load %arg10[%c0_38, %c0_39] : memref<1x1xf32, #tpu.memory_space<vmem>>, vector<1x1xf32>
      tpu.vector_store %arg10[%c0_38, %c0_39], %81 {strides = array<i32>} : memref<1x1xf32, #tpu.memory_space<vmem>>, vector<1x1xf32>,
      %c0_i32_40 = arith.constant 0 : i32
      %83 = arith.addi %c0_i32_40, %1 : i32
      %c0_i32_41 = arith.constant 0 : i32
      %c0_i32_42 = arith.constant 0 : i32
      %c0_i32_43 = arith.constant 0 : i32
      %c0_i32_44 = arith.constant 0 : i32
      %84 = tpu.memref_slice %arg4[%83, %c0_i32_43, %c0_i32_44] : memref<10x8x128xf32, #tpu.memory_space<any>> -> memref<8x8x128xf32, #tpu.memory_space<any>>
      %c0_i32_45 = arith.constant 0 : i32
      %c0_i32_46 = arith.constant 0 : i32
      %c0_i32_47 = arith.constant 0 : i32
      %85 = tpu.memref_slice %arg8[%c0_i32_41, %c0_i32_45, %c0_i32_46, %c0_i32_47] : memref<2x8x8x128xf32, #tpu.memory_space<vmem>> -> memref<1x8x8x128xf32, #tpu.memory_space<vmem>>
      %86 = tpu.memref_squeeze %85 : memref<1x8x8x128xf32, #tpu.memory_space<vmem>> -> memref<8x8x128xf32, #tpu.memory_space<vmem>>
      %87 = tpu.memref_slice %arg9[%c0_i32_42] : memref<2x!tpu.dma_semaphore, #tpu.memory_space<semaphore_mem>> -> memref<1x!tpu.dma_semaphore, #tpu.memory_space<semaphore_mem>>
      %88 = tpu.memref_squeeze %87 : memref<1x!tpu.dma_semaphore, #tpu.memory_space<semaphore_mem>> -> memref<!tpu.dma_semaphore, #tpu.memory_space<semaphore_mem>>
      tpu.enqueue_dma source(%84 : memref<8x8x128xf32, #tpu.memory_space<any>>) target(%86 : memref<8x8x128xf32, #tpu.memory_space<vmem>>) target_semaphore(%88 : memref<!tpu.dma_semaphore, #tpu.memory_space<semaphore_mem>>)
    } else {
    }
    %c8_i32 = arith.constant 8 : i32
    %6 = arith.muli %arg1, %c8_i32 : i32
    %7 = arith.addi %6, %1 : i32
    %c0_i32_1 = arith.constant 0 : i32
    %c0_i32_2 = arith.constant 0 : i32
    %8 = tpu.memref_slice %arg4[%7, %c0_i32_1, %c0_i32_2] : memref<10x8x128xf32, #tpu.memory_space<any>> -> memref<8x8x128xf32, #tpu.memory_space<any>>
    %c0_i32_3 = arith.constant 0 : i32
    %c0_i32_4 = arith.constant 0 : i32
    %c0_i32_5 = arith.constant 0 : i32
    %9 = tpu.memref_slice %arg8[%2, %c0_i32_3, %c0_i32_4, %c0_i32_5] : memref<2x8x8x128xf32, #tpu.memory_space<vmem>> -> memref<1x8x8x128xf32, #tpu.memory_space<vmem>>
    %10 = tpu.memref_squeeze %9 : memref<1x8x8x128xf32, #tpu.memory_space<vmem>> -> memref<8x8x128xf32, #tpu.memory_space<vmem>>
    %11 = tpu.memref_slice %arg9[%2] : memref<2x!tpu.dma_semaphore, #tpu.memory_space<semaphore_mem>> -> memref<1x!tpu.dma_semaphore, #tpu.memory_space<semaphore_mem>>
    %12 = tpu.memref_squeeze %11 : memref<1x!tpu.dma_semaphore, #tpu.memory_space<semaphore_mem>> -> memref<!tpu.dma_semaphore, #tpu.memory_space<semaphore_mem>>
    tpu.wait_dma2 semaphore(%12 : memref<!tpu.dma_semaphore, #tpu.memory_space<semaphore_mem>>) src(%8 : memref<8x8x128xf32, #tpu.memory_space<any>>) dst(%10 : memref<8x8x128xf32, #tpu.memory_space<vmem>>)
    %c1_i32_6 = arith.constant 1 : i32
    %13 = arith.addi %arg1, %c1_i32_6 : i32
    %c1_i32_7 = arith.constant 1 : i32
    %14 = arith.cmpi slt, %13, %c1_i32_7 : i32
    %15 = arith.extui %14 : i1 to i32
    %c0_i32_8 = arith.constant 0 : i32
    %16 = arith.cmpi ne, %15, %c0_i32_8 : i32
    scf.if %16 {
      %c1_i32_37 = arith.constant 1 : i32
      %81 = arith.addi %arg1, %c1_i32_37 : i32
      %c1_i32_38 = arith.constant 1 : i32
      %82 = arith.subi %c1_i32_38, %2 : i32
      %c8_i32_39 = arith.constant 8 : i32
      %83 = arith.muli %81, %c8_i32_39 : i32
      %84 = arith.addi %83, %1 : i32
      %c0_i32_40 = arith.constant 0 : i32
      %c0_i32_41 = arith.constant 0 : i32
      %85 = tpu.memref_slice %arg4[%84, %c0_i32_40, %c0_i32_41] : memref<10x8x128xf32, #tpu.memory_space<any>> -> memref<8x8x128xf32, #tpu.memory_space<any>>
      %c0_i32_42 = arith.constant 0 : i32
      %c0_i32_43 = arith.constant 0 : i32
      %c0_i32_44 = arith.constant 0 : i32
      %86 = tpu.memref_slice %arg8[%82, %c0_i32_42, %c0_i32_43, %c0_i32_44] : memref<2x8x8x128xf32, #tpu.memory_space<vmem>> -> memref<1x8x8x128xf32, #tpu.memory_space<vmem>>
      %87 = tpu.memref_squeeze %86 : memref<1x8x8x128xf32, #tpu.memory_space<vmem>> -> memref<8x8x128xf32, #tpu.memory_space<vmem>>
      %88 = tpu.memref_slice %arg9[%82] : memref<2x!tpu.dma_semaphore, #tpu.memory_space<semaphore_mem>> -> memref<1x!tpu.dma_semaphore, #tpu.memory_space<semaphore_mem>>
      %89 = tpu.memref_squeeze %88 : memref<1x!tpu.dma_semaphore, #tpu.memory_space<semaphore_mem>> -> memref<!tpu.dma_semaphore, #tpu.memory_space<semaphore_mem>>
      tpu.enqueue_dma source(%85 : memref<8x8x128xf32, #tpu.memory_space<any>>) target(%87 : memref<8x8x128xf32, #tpu.memory_space<vmem>>) target_semaphore(%89 : memref<!tpu.dma_semaphore, #tpu.memory_space<semaphore_mem>>)
    } else {
    }
    %17 = arith.index_cast %2 : i32 to index
    %c0 = arith.constant 0 : index
    %c0_9 = arith.constant 0 : index
    %c0_10 = arith.constant 0 : index
    %18 = vector.load %arg8[%17, %c0, %c0_9, %c0_10] : memref<2x8x8x128xf32, #tpu.memory_space<vmem>>, vector<1x8x8x128xf32>
    %19 = vector.shape_cast %18 : vector<1x8x8x128xf32> to vector<8x8x128xf32>
    %20 = vector.shape_cast %19 : vector<8x8x128xf32> to vector<64x128xf32>
    %c0_11 = arith.constant 0 : index
    %c0_12 = arith.constant 0 : index
    %c0_13 = arith.constant 0 : index
    %21 = vector.load %arg5[%c0_11, %c0_12, %c0_13] : memref<1x128x128xf32, #tpu.memory_space<vmem>>, vector<1x128x128xf32>
    %22 = vector.shape_cast %21 : vector<1x128x128xf32> to vector<128x128xf32>
    %cst = arith.constant dense<0.000000e+00> : vector<64x128xf32>
    %23 = tpu.matmul %20, %22, %cst {dimension_numbers = #tpu.dot_dimension_numbers<[1], [0], [0], [1], [0, 0, 1, 1], [], []>} : vector<64x128xf32>, vector<128x128xf32>, vector<64x128xf32> -> vector<64x128xf32>
    %c0_14 = arith.constant 0 : index
    %c0_15 = arith.constant 0 : index
    %c0_16 = arith.constant 0 : index
    %24 = vector.load %arg6[%c0_14, %c0_15, %c0_16] : memref<1x1x128xf32, #tpu.memory_space<vmem>>, vector<1x1x128xf32>
    %25 = vector.shape_cast %24 : vector<1x1x128xf32> to vector<1x128xf32>
    %26 = vector.broadcast %25 : vector<1x128xf32> to vector<64x128xf32>
    %27 = arith.addf %23, %26 : vector<64x128xf32>
    %c0_17 = arith.constant 0 : index
    %c0_18 = arith.constant 0 : index
    %c0_19 = arith.constant 0 : index
    %28 = vector.load %arg3[%c0_17, %c0_18, %c0_19] : memref<8x8x128xf32, #tpu.memory_space<vmem>>, vector<8x8x128xf32>
    %29 = vector.shape_cast %27 : vector<64x128xf32> to vector<8x8x128xf32>
    "tpu.trace_start"() <{level = 10 : i32, message = "sic,sjc->sij"}> : () -> ()
    %cst_20 = arith.constant dense<0.000000e+00> : vector<8x8x8xf32>
    %30 = tpu.matmul %28, %29, %cst_20 {dimension_numbers = #tpu.dot_dimension_numbers<[2], [2], [1], [1], [0, 0, 0, 1, 1, 1], [0], [0]>} : vector<8x8x128xf32>, vector<8x8x128xf32>, vector<8x8x8xf32> -> vector<8x8x8xf32>
    "tpu.trace_stop"() : () -> ()
    %31 = tpu.iota {dimensions = array<i32: 0>} : vector<8x8xi32>
    %32 = tpu.iota {dimensions = array<i32: 1>} : vector<8x8xi32>
    %33 = arith.cmpi eq, %31, %32 : vector<8x8xi32>
    %34 = vector.shape_cast %33 : vector<8x8xi1> to vector<1x8x8xi1>
    %cst_21 = arith.constant 0.000000e+00 : f32
    %35 = vector.shape_cast %34 : vector<1x8x8xi1> to vector<1x8x8xi1>
    %36 = vector.broadcast %35 : vector<1x8x8xi1> to vector<8x8x8xi1>
    %37 = vector.broadcast %cst_21 : f32 to vector<8x8x8xf32>
    %38 = arith.select %36, %30, %37 : vector<8x8x8xi1>, vector<8x8x8xf32>
    %cst_22 = arith.constant dense<0.000000e+00> : vector<8x8xf32>
    %39 = vector.multi_reduction <add>, %38, %cst_22 [2] : vector<8x8x8xf32> to vector<8x8xf32>
    %40 = tpu.iota {dimensions = array<i32: 2>} : vector<1x1x8xi32>
    %c2_i32 = arith.constant 2 : i32
    %41 = vector.broadcast %c2_i32 : i32 to vector<1x1x8xi32>
    %42 = arith.cmpi slt, %40, %41 : vector<1x1x8xi32>
    %cst_23 = arith.constant -1.000000e+30 : f32
    %43 = vector.shape_cast %42 : vector<1x1x8xi1> to vector<1x1x8xi1>
    %44 = vector.broadcast %43 : vector<1x1x8xi1> to vector<8x8x8xi1>
    %45 = vector.broadcast %cst_23 : f32 to vector<8x8x8xf32>
    %46 = arith.select %44, %30, %45 : vector<8x8x8xi1>, vector<8x8x8xf32>
    %cst_24 = arith.constant dense<0xFF800000> : vector<8x8xf32>
    %47 = vector.multi_reduction <maximumf>, %46, %cst_24 [2] : vector<8x8x8xf32> to vector<8x8xf32>
    %48 = vector.shape_cast %47 : vector<8x8xf32> to vector<8x8x1xf32>
    %49 = vector.broadcast %48 : vector<8x8x1xf32> to vector<8x8x8xf32>
    %50 = arith.subf %46, %49 : vector<8x8x8xf32>
    %51 = math.exp %50 : vector<8x8x8xf32>
    %cst_25 = arith.constant dense<0.000000e+00> : vector<8x8xf32>
    %52 = vector.multi_reduction <add>, %51, %cst_25 [2] : vector<8x8x8xf32> to vector<8x8xf32>
    %53 = math.log %52 : vector<8x8xf32>
    %54 = vector.shape_cast %48 : vector<8x8x1xf32> to vector<8x8xf32>
    %55 = arith.addf %53, %54 : vector<8x8xf32>
    %c8_i32_26 = arith.constant 8 : i32
    %56 = arith.muli %arg1, %c8_i32_26 : i32
    %57 = tpu.iota {dimensions = array<i32: 0>} : vector<8x8xi32>
    %58 = vector.broadcast %56 : i32 to vector<8x8xi32>
    %59 = arith.addi %58, %57 : vector<8x8xi32>
    %c8_i32_27 = arith.constant 8 : i32
    %60 = arith.subi %c8_i32_27, %1 : i32
    %61 = vector.broadcast %60 : i32 to vector<8x8xi32>
    %62 = arith.cmpi slt, %59, %61 : vector<8x8xi32>
    %63 = tpu.iota {dimensions = array<i32: 1>} : vector<8x8xi32>
    %c2_i32_28 = arith.constant 2 : i32
    %64 = vector.broadcast %c2_i32_28 : i32 to vector<8x8xi32>
    %65 = arith.cmpi slt, %63, %64 : vector<8x8xi32>
    %66 = arith.andi %62, %65 : vector<8x8xi1>
    %c0_29 = arith.constant 0 : index
    %c0_30 = arith.constant 0 : index
    %67 = vector.load %arg10[%c0_29, %c0_30] : memref<1x1xf32, #tpu.memory_space<vmem>>, vector<1x1xf32>
    %68 = arith.subf %39, %55 : vector<8x8xf32>
    %cst_31 = arith.constant 0.000000e+00 : f32
    %69 = vector.broadcast %cst_31 : f32 to vector<8x8xf32>
    %70 = arith.select %66, %68, %69 : vector<8x8xi1>, vector<8x8xf32>
    %71 = vector.shape_cast %70 : vector<8x8xf32> to vector<1x8x8xf32>
    %cst_32 = arith.constant dense<0.000000e+00> : vector<1xf32>
    %72 = vector.multi_reduction <add>, %71, %cst_32 [1, 2] : vector<1x8x8xf32> to vector<1xf32>
    %73 = vector.shape_cast %72 : vector<1xf32> to vector<1x1x1xf32>
    %74 = vector.extract %73[0, 0, 0] : f32 from vector<1x1x1xf32>
    %75 = vector.broadcast %74 : f32 to vector<1x1xf32>
    %76 = arith.addf %67, %75 : vector<1x1xf32>
    %c0_33 = arith.constant 0 : index
    %c0_34 = arith.constant 0 : index
    %77 = vector.load %arg10[%c0_33, %c0_34] : memref<1x1xf32, #tpu.memory_space<vmem>>, vector<1x1xf32>
    tpu.vector_store %arg10[%c0_33, %c0_34], %76 {strides = array<i32>} : memref<1x1xf32, #tpu.memory_space<vmem>>, vector<1x1xf32>,
    %c0_i32_35 = arith.constant 0 : i32
    %78 = arith.cmpi eq, %arg1, %c0_i32_35 : i32
    %79 = arith.extui %78 : i1 to i32
    %c0_i32_36 = arith.constant 0 : i32
    %80 = arith.cmpi ne, %79, %c0_i32_36 : i32
    scf.if %80 {
      %c8_i32_37 = arith.constant 8 : i32
      %81 = arith.subi %c8_i32_37, %1 : i32
      %c2_i32_38 = arith.constant 2 : i32
      %82 = arith.muli %c2_i32_38, %81 : i32
      %83 = arith.sitofp %82 : i32 to f32
      %c0_39 = arith.constant 0 : index
      %c0_40 = arith.constant 0 : index
      %84 = vector.load %arg10[%c0_39, %c0_40] : memref<1x1xf32, #tpu.memory_space<vmem>>, vector<1x1xf32>
      %85 = vector.broadcast %83 : f32 to vector<1x1xf32>
      %86 = arith.divf %84, %85 : vector<1x1xf32>
      %c0_41 = arith.constant 0 : index
      %c0_42 = arith.constant 0 : index
      %c0_43 = arith.constant 0 : index
      %87 = vector.load %arg7[%c0_41, %c0_42, %c0_43] : memref<1x1x1xf32, #tpu.memory_space<vmem>>, vector<1x1x1xf32>
      %88 = vector.shape_cast %87 : vector<1x1x1xf32> to vector<1x1xf32>
      %89 = vector.shape_cast %86 : vector<1x1xf32> to vector<1x1x1xf32>
      tpu.vector_store %arg7[%c0_41, %c0_42, %c0_43], %89 {strides = array<i32>} : memref<1x1x1xf32, #tpu.memory_space<vmem>>, vector<1x1x1xf32>,
    } else {
    }
    return
  }
  func.func @transform_0(%arg0: i32, %arg1: i32, %arg2: memref<2xi32, #tpu.memory_space<smem>>) -> (i32, i32, i32) {
    %c0_i32 = arith.constant 0 : i32
    %c0_i32_0 = arith.constant 0 : i32
    %c0_i32_1 = arith.constant 0 : i32
    return %arg1, %c0_i32, %c0_i32_0 : i32, i32, i32
  }
  func.func @transform_2(%arg0: i32, %arg1: i32, %arg2: memref<2xi32, #tpu.memory_space<smem>>) -> (i32, i32, i32) {
    %c0_i32 = arith.constant 0 : i32
    %c0_i32_0 = arith.constant 0 : i32
    %c0_i32_1 = arith.constant 0 : i32
    return %arg0, %c0_i32, %c0_i32_0 : i32, i32, i32
  }
  func.func @transform_3(%arg0: i32, %arg1: i32, %arg2: memref<2xi32, #tpu.memory_space<smem>>) -> (i32, i32, i32) {
    %c0_i32 = arith.constant 0 : i32
    %c0_i32_0 = arith.constant 0 : i32
    %c0_i32_1 = arith.constant 0 : i32
    return %arg0, %c0_i32, %c0_i32_0 : i32, i32, i32
  }
  func.func @transform_4(%arg0: i32, %arg1: i32, %arg2: memref<2xi32, #tpu.memory_space<smem>>) -> (i32, i32, i32) {
    %c0_i32 = arith.constant 0 : i32
    %c0_i32_0 = arith.constant 0 : i32
    %c0_i32_1 = arith.constant 0 : i32
    return %arg0, %c0_i32, %c0_i32_0 : i32, i32, i32
  }
}

</mosaic_0001>

<bundles_post_ra>
// kernel: tpu_custom_call.1
= control target key start
LH: loop header
LB: loop body
LE: loop exit
PB: predicated region body
PF: predicated region fallthrough
CT: control target
= control target key end

     0   :  { %s2232_s0 = inlined_call_operand.hbm [shape: s32[2], index: 0, kind: input, shape index: {}]   ;;  %s2233_s1 = inlined_call_operand.hbm [shape: f32[8,8,128], index: 1, kind: input, shape index: {}]   ;;  %s2234_s2 = inlined_call_operand.hbm [shape: f32[10,8,128], index: 2, kind: input, shape index: {}]   ;;  %s2235_s3 = inlined_call_operand.hbm [shape: f32[2,128,128], index: 3, kind: input, shape index: {}]   ;;  %s2236_s4 = inlined_call_operand.vmem [shape: f32[2,1,128], index: 4, kind: input, shape index: {}]   ;;  %s2237_s5 = inlined_call_operand.vmem [shape: f32[2,1,1], index: 5, kind: output, shape index: {}]  }
   0x1   :  { %s1646_s20 = scalar_lea.hbm %s2232_s0, 16 }
   0x2   :  { %p1647_p0 = scmp.ne.s32.totalorder %s2232_s0, %s1646_s20  ;;  %p1650_p1 = scmp.lt.u32.totalorder %s1646_s20, %s2232_s0 }
   0x4   :  { %p1652_p2 = pnand %p1650_p1, %p1647_p0 }
   0x6   :  { %1655 = shalt.err (!%p1652_p2)  }
   0x7   :  { %s1798_s25 = smov [#allocation6]  }
   0x8   :  { %11 = dma.hbm_to_smem %s2232_s0, 16, %s1798_s25, [#allocation5] }
   0x9   :  { %1762 = dma.done.wait [#allocation5], 16 }
   0xa   :  { %1763 = vsyncadd [#allocation5], 4294967280 }
   0xb   :  { %13 = sfence }
   0xc   :  { %14 = vsyncpa [#allocation8], 0 }
   0xd   :  { %15 = vsyncpa [#allocation10], 0 }
   0xe   :  { %17 = vsyncpa [#allocation10 + $0x1], 0  ;;  %s1848_s28 = smov 0   ;;  %s1850_s29 = smov 0  }
   0xf   :  { %s1852_s30 = smov 0   ;;  %s1854_s6 = smov 0  }
  0x10   :  { %s1856_s7 = smov 0   ;;  %s1858_s8 = smov 0  }
  0x11 LB: > { %s1360_s0 = sadd.s32 4294967295, %s1796_s8   ;;  %p81_p3 = scmp.ne.s32.totalorder %s1780_s29, %s1776_s28  ;;  %s1796_s8 = sphi %s1858_s8, %s23_s8   ;;  %s1792_s7 = sphi %s1856_s7, %s2256_s7   ;;  %s1788_s6 = sphi %s1854_s6, %s2255_s6   ;;  %s1784_s30 = sphi %s1852_s30, %s2254_s30   ;;  %s1780_s29 = sphi %s1850_s29, %s2253_s29   ;;  %s1776_s28 = sphi %s1848_s28, %s2252_s28  }
  0x12   : > { %p1878_p4 = scmp.eq.s32.totalorder %s1360_s0, 0  ;;  %p1362_p5 = scmp.ge.s32.totalorder %s1796_s8, 1 }
  0x13   : > { %p144_p6 = scmp.lt.s32.totalorder %s1796_s8, 3  ;;  %s1799_s12 = smov [#allocation7]  }
  0x14   : > { %s2242_s9 = scalar_select %p1878_p4, 1, 0 }
  0x15   : > { %p1886_p7 = por %p1878_p4, %p81_p3  ;;  %p1890_p8 = pnand %p1362_p5, %p144_p6 }
  0x16   : > { %s159_s13 = sshll.u32 %s1799_s12, 4  ;;  %s35_s15 = sadd.s32 1, %s1792_s7  ;;  %s160_s13 = int_to_ptr.vmem [resolvable:$true] %s159_s13 }
  0x17   : > { %s2243_s10 = scalar_select %p1886_p7, 1, 0 }
  0x18   : > { %s2244_s11 = scalar_select %p1890_p8, 1, 0 }
  0x19   : > { %p1546_p9 = pneg %p1890_p8  ;;  %s1656_s18 = scalar_lea.hbm %s2233_s1, 1024 }
  0x1a   : > { %p1657_p11 = scmp.ne.s32.totalorder %s2233_s1, %s1656_s18  ;;  %p1663_p1 = scmp.lt.u32.totalorder %s1656_s18, %s2233_s1 }
  0x1b   : > { %p1898_p10 = pnand %p1546_p9, %p1878_p4 }
  0x1d   : > { %p1658_p12 = pneg %p1898_p10 }
  0x1f   : > { %p1659_p13 = pnand %p1658_p12, %p1657_p11 }
  0x21   : > { %p1660_p0 = pneg %p1659_p13 }
  0x23   : > { %p1665_p2 = pnand %p1663_p1, %p1660_p0 }
  0x25   : > { %1668 = shalt.err (!%p1665_p2)
}
  0x26   : > { %s1669_s23 = scalar_lea.vmem %s160_s13, 1024  ;;  %p1677_p9 = scmp.lt.s32.totalorder %s160_s13, %s160_s13 }
  0x27   : > { %p1670_p3 = scmp.ne.s32.totalorder %s160_s13, %s1669_s23  ;;  %p1678_p7 = scmp.lt.s32.totalorder %s1669_s23, %s1669_s23 }
  0x29   : > { %p1672_p5 = pnand %p1670_p3, %p1658_p12  ;;  %p1679_p4 = por %p1678_p7, %p1677_p9 }
  0x2b   : > { %p1673_p6 = pneg %p1672_p5 }
  0x2d   : > { %p1680_p8 = pnand %p1679_p4, %p1673_p6 }
  0x2f   : > { %1683 = shalt.err (!%p1680_p8)
}
  0x30   : > { %s1800_s24 = smov 128   ;;  %s1801_s25 = smov 8  }
  0x31   : > { %1549 = dma.hbm_to_vmem [thread:$0]  (!%p1898_p10), %s2233_s1, 1024, %s160_s13, [#allocation8], %s1800_s24, %s1800_s24, %s1801_s25  }
  0x32   : > { %p37_p4 = scmp.ge.s32.totalorder %s35_s15, 2  ;;  %s68_s28 = sadd.s32 1, %s1784_s30 }
  0x33   : > { %p75_p7 = scmp.ne.s32.totalorder %s1784_s30, %s1780_s29  ;;  %p76_p8 = scmp.eq.s32.totalorder %s1796_s8, 0 }
  0x34   : > { %s2258_s15 = smov (%p37_p4, %s35_s15), 0  ;;  %p1555_p12 = scmp.lt.s32.totalorder %s1796_s8, 2 }
  0x35   : > { %p77_p11 = por %p76_p8, %p75_p7  ;;  %s65_s0 = ssub.s32 %s1792_s7, %s2258_s15 }
  0x36   : > { %s173_s12 = sand.u32 1, %s1784_s30   ;;  %p66_p13 = scmp.eq.s32.totalorder %s65_s0, 0 }
  0x37   : > { %s1365_s14 = sshll.u32 %s173_s12, 7  ;;  %s1380_s16 = sshll.u32 %s1792_s7, 11 }
  0x38   : > { %s1934_s17 = scalar_select %p66_p13, %s1784_s30, %s68_s28  }
  0x39   : > { %s1939_s13 = scalar_lea.hbm %s2235_s3, %s1380_s16  ;;  %s177_s20 = scalar_lea.vmem [#allocation9], %s1365_s14 }
  0x3a   : > { %s184_s21 = sshll.u32 %s177_s20, 4  ;;  %p1941_p10 = pnand %p1555_p12, %p77_p11  ;;  %s1945_s21 = int_to_ptr.vmem [resolvable:$true] %s184_s21 }
  0x3b   : > { %s1947_s23 = scalar_lea.sflag [#allocation10], %s173_s12  ;;  %s1684_s26 = scalar_lea.hbm %s1939_s13, 2048 }
  0x3c   : > { %p1685_p0 = scmp.ne.s32.totalorder %s1939_s13, %s1684_s26  ;;  %p1686_p1 = pneg %p1941_p10 }
  0x3d   : > { %s1689_s0 = scalar_lea.hbm %s2235_s3, 4096  ;;  %p1690_p5 = scmp.lt.u32.totalorder %s1939_s13, %s2235_s3 }
  0x3e   : > { %p1687_p2 = pnand %p1686_p1, %p1685_p0  ;;  %p1691_p6 = scmp.lt.u32.totalorder %s1689_s0, %s1684_s26 }
  0x3f   : > { %p1693_p4 = scmp.lt.u32.totalorder %s1684_s26, %s1939_s13 }
  0x40   : > { %p1688_p3 = pneg %p1687_p2  ;;  %p1692_p9 = por %p1691_p6, %p1690_p5 }
  0x42   : > { %p1694_p7 = por %p1693_p4, %p1692_p9 }
  0x44   : > { %p1695_p8 = pnand %p1694_p7, %p1688_p3 }
  0x46   : > { %1698 = shalt.err (!%p1695_p8)
}
  0x47   : > { %s1699_s12 = scalar_lea.vmem %s1945_s21, 2048  ;;  %s1802_s18 = smov [#allocation9]  }
  0x48   : > { %p1700_p11 = scmp.ne.s32.totalorder %s1945_s21, %s1699_s12  ;;  %s1704_s19 = sshll.u32 %s1802_s18, 4  ;;  %s1705_s19 = int_to_ptr.vmem [resolvable:$false] %s1704_s19 }
  0x49   : > { %s1706_s20 = scalar_lea.vmem %s1705_s19, 4096  ;;  %p1707_p0 = scmp.lt.s32.totalorder %s1945_s21, %s1705_s19 }
  0x4a   : > { %p1702_p12 = pnand %p1700_p11, %p1686_p1  ;;  %p1708_p2 = scmp.lt.s32.totalorder %s1706_s20, %s1699_s12 }
  0x4c   : > { %p1703_p13 = pneg %p1702_p12  ;;  %p1709_p5 = por %p1708_p2, %p1707_p0 }
  0x4e   : > { %p1710_p6 = pnand %p1709_p5, %p1703_p13 }
  0x50   : > { %1713 = shalt.err (!%p1710_p6)
}
  0x51   : > { %1553 = dma.hbm_to_vmem [thread:$0]  (!%p1941_p10), %s1939_s13, 2048, %s1945_s21, %s1947_s23, %s1800_s24, %s1800_s24, %s1801_s25  }
  0x52   : > { %p2247_p1 = scmp.ne.s32.totalorder %s2244_s11, 0 }
  0x53   : > { %p2248_p3 = scmp.ne.s32.totalorder (!%p2247_p1), %s2242_s9, 0 }
  0x54   : > { %202 = sbr.rel (%p2247_p1) target bundleno = 1161 (0x489), region = 32 }
  0x5b   : > { %1765 = dma.done.wait (%p2248_p3), [#allocation8], 1024  }
  0x5c   : > { %1767 = vsyncadd (%p2248_p3), [#allocation8], 4294966272  ;;  %s208_s26 = sand.u32 1, %s1780_s29   ;;  %p2249_p9 = scmp.ne.s32.totalorder %s2243_s10, 0 }
  0x5d   : > { %s1370_s22 = sshll.u32 %s208_s26, 7  ;;  %s209_s27 = scalar_lea.sflag [#allocation10], %s208_s26 }
  0x5e   : > { %s1985_s28 = scalar_lea.vmem [#allocation9], %s1370_s22 }
  0x5f   : > { %1769 = dma.done.wait (%p2249_p9), %s209_s27, 2048  }
  0x60   : > { %1771 = vsyncadd (%p2249_p9), %s209_s27, 4294965248  ;;  %p237_p10 = scmp.lt.s32.totalorder %s1788_s6, 1  ;;  %vm249_vm0 = vcmask 0   ;;  %s1993_s11 = sld [smem:[#allocation6 + %s1788_s6]]  ;;  %v1803_v0 = vmov 0.0  }
  0x61   : > { %250 = vst.msk [vmem:[#allocation4] sm:$0x1] %vm249_vm0, %v1803_v0  ;;  %s1804_s9 = smov [#allocation2]   ;;  %s1716_s22 = scalar_lea.hbm %s2234_s2, 1280 }
  0x62   : > { %s2260_s6 = smov (!%p237_p10, %s1788_s6), 1  ;;  %s261_s24 = sshll.u32 %s1804_s9, 4  ;;  %s262_s24 = int_to_ptr.vmem [resolvable:$true] %s261_s24 }
  0x63   : > { %s239_s13 = scalar_lea.vmem %s2236_s4, %s2260_s6  ;;  %s242_s0 = scalar_lea.vmem %s2237_s5, %s2260_s6 }
  0x66   : > { %s1381_s14 = sshll.u32 %s1993_s11, 7 }
  0x67   : > { %s253_s18 = scalar_lea.hbm %s2234_s2, %s1381_s14 }
  0x68   : > { %s1714_s19 = scalar_lea.hbm %s253_s18, 1024  ;;  %p1717_p7 = scmp.lt.u32.totalorder %s253_s18, %s2234_s2 }
  0x69   : > { %p1715_p4 = scmp.ne.s32.totalorder %s253_s18, %s1714_s19  ;;  %p1718_p8 = scmp.lt.u32.totalorder %s1716_s22, %s1714_s19 }
  0x6a   : > { %p1720_p12 = scmp.lt.u32.totalorder %s1714_s19, %s253_s18 }
  0x6b   : > { %p1719_p11 = por %p1718_p8, %p1717_p7 }
  0x6d   : > { %p1721_p13 = por %p1720_p12, %p1719_p11 }
  0x6f   : > { %p1722_p0 = pnand %p1721_p13, %p1715_p4 }
  0x71   : > { %1725 = shalt.err (!%p1722_p0)  }
  0x72   : > { %s1726_s10 = scalar_lea.vmem %s262_s24, 1024  ;;  %s1730_s25 = scalar_lea.vmem %s262_s24, 2048 }
  0x73   : > { %p1727_p2 = scmp.ne.s32.totalorder %s262_s24, %s1726_s10  ;;  %p1731_p5 = scmp.lt.s32.totalorder %s262_s24, %s262_s24 }
  0x74   : > { %p1732_p6 = scmp.lt.s32.totalorder %s1730_s25, %s1726_s10 }
  0x76   : > { %p1733_p1 = por %p1732_p6, %p1731_p5 }
  0x78   : > { %p1734_p3 = pnand %p1733_p1, %p1727_p2 }
  0x7a   : > { %1737 = shalt.err (!%p1734_p3)  }
  0x7b   : > { %264 = dma.hbm_to_vmem [thread:$0]  %s253_s18, 1024, %s262_s24, [#allocation3] }
  0x7c   : > { %1772 = dma.done.wait [#allocation3], 1024 }
  0x7d   : > { %1773 = vsyncadd [#allocation3], 4294966272  ;;  %1466 = vmatprep.subr.mxu1 %v1803_v0  ;;  %v306_v1 = vld [vmem:[%s1985_s28] sm:$0xff]  ;;  %v307_v2 = vld [vmem:[%s1985_s28 + $0x8] sm:$0xff]  ;;  %vm1805_vm1 = vmmov 0   ;;  %v1002_v58 = vlaneseq  ;;  %vm1017_vm3 = vcmask 64512  }
  0x7e   : > { %v308_v3 = vld [vmem:[%s1985_s28 + $0x10] sm:$0xff]  ;;  %v1506_v4 = vpack.c.bf16 %v307_v2, %v306_v1  ;;  %v309_v5 = vld [vmem:[%s1985_s28 + $0x18] sm:$0xff]  ;;  %v310_v7 = vld [vmem:[%s1985_s28 + $0x20] sm:$0xff]  ;;  %1468 = vmatprep.mubr.msk.f32.mxu1 %vm1805_vm1, %v1803_v0  ;;  %vm1204_vm5 = vcmask 1041409   ;;  %vm1206_vm6 = vcmask 1042434   ;;  %vm1208_vm7 = vcmask 1043459  }
  0x7f   : > { %v1510_v6 = vpack.c.bf16 %v309_v5, %v308_v3  ;;  %v311_v8 = vld [vmem:[%s1985_s28 + $0x28] sm:$0xff]  ;;  %v298_v10 = vld [vmem:[#allocation2] sm:$0xff]  ;;  %v312_v11 = vld [vmem:[%s1985_s28 + $0x30] sm:$0xff]  ;;  %v2064_v59 = vand.u32 127, %v1002_v58  ;;  %vm1210_vm8 = vcmask 1044484   ;;  %vm1212_vm9 = vcmask 1045509  }
  0x80   : > { %1507 = vmatprep.subr.bf16.mxu0 %v1506_v4  ;;  %v1514_v9 = vpack.c.bf16 %v311_v8, %v310_v7  ;;  %v313_v12 = vld [vmem:[%s1985_s28 + $0x38] sm:$0xff]  ;;  %1454 = vmatprep.mubr.f32.mxu0 %v298_v10  ;;  %v314_v14 = vld [vmem:[%s1985_s28 + $0x40] sm:$0xff]  ;;  %v315_v15 = vld [vmem:[%s1985_s28 + $0x48] sm:$0xff]  ;;  %vm1214_vm11 = vcmask 1046534   ;;  %vm1216_vm12 = vcmask 1047559  }
  0x81   : > { %1509 = vmatpush3.bf16.msra.mxu0 %v1506_v4  ;;  %v1518_v13 = vpack.c.bf16 %v313_v12, %v312_v11  ;;  %v1522_v16 = vpack.c.bf16 %v315_v15, %v314_v14  ;;  %v316_v17 = vld [vmem:[%s1985_s28 + $0x50] sm:$0xff]  ;;  %v317_v18 = vld [vmem:[%s1985_s28 + $0x58] sm:$0xff]  ;;  %v318_v20 = vld [vmem:[%s1985_s28 + $0x60] sm:$0xff]  ;;  %vm1042_vm2 = vcmp.lt.s32.totalorder %v2064_v59, 2 }
  0x82   : > { %1511 = vmatprep.subr.bf16.mxu0 %v1510_v6  ;;  %v1526_v19 = vpack.c.bf16 %v317_v18, %v316_v17  ;;  %v319_v21 = vld [vmem:[%s1985_s28 + $0x68] sm:$0xff]  ;;  %v320_v23 = vld [vmem:[%s1985_s28 + $0x70] sm:$0xff]  ;;  %v321_v24 = vld [vmem:[%s1985_s28 + $0x78] sm:$0xff] }
  0x83   : > { %v1530_v22 = vpack.c.bf16 %v319_v21, %v318_v20  ;;  %v1534_v25 = vpack.c.bf16 %v321_v24, %v320_v23  ;;  %v299_v26 = vld [vmem:[#allocation2 + $0x8] sm:$0xff]  ;;  %v300_v27 = vld [vmem:[#allocation2 + $0x10] sm:$0xff]  ;;  %v301_v28 = vld [vmem:[#allocation2 + $0x18] sm:$0xff] }
  0x84   : > { %v302_v29 = vld [vmem:[#allocation2 + $0x20] sm:$0xff]  ;;  %v303_v30 = vld [vmem:[#allocation2 + $0x28] sm:$0xff]  ;;  %v304_v31 = vld [vmem:[#allocation2 + $0x30] sm:$0xff] }
  0x85   : > { %1513 = vmatpush3.bf16.msra.mxu0 %v1510_v6  ;;  %v305_v32 = vld [vmem:[#allocation2 + $0x38] sm:$0xff]  ;;  %v1374_v33 = vld [vmem:[%s239_s13] ss:$0 sm:$0xff]  ;;  %v434_v38 = vld [vmem:[#allocation7] sm:$0xff]  ;;  %s1151_s13 = ssub.s32 8, %s1993_s11 }
  0x86   : > { %1515 = vmatprep.subr.bf16.mxu0 %v1514_v9  ;;  %v435_v42 = vld [vmem:[#allocation7 + $0x8] sm:$0xff]  ;;  %v436_v45 = vld [vmem:[#allocation7 + $0x10] sm:$0xff]  ;;  %v437_v50 = vld [vmem:[#allocation7 + $0x18] sm:$0xff]  ;;  %s1375_s21 = sshll.u32 %s1151_s13, 1 }
  0x87   : > { %v438_v51 = vld [vmem:[#allocation7 + $0x20] sm:$0xff]  ;;  %v439_v54 = vld [vmem:[#allocation7 + $0x28] sm:$0xff]  ;;  %v440_v55 = vld [vmem:[#allocation7 + $0x30] sm:$0xff]  ;;  %s1238_s23 = scvt.s32.f32 %s1375_s21 }
  0x88   : > { %v441_v57 = vld [vmem:[#allocation7 + $0x38] sm:$0xff] }
  0x89   : > { %1517 = vmatpush3.bf16.msra.mxu0 %v1514_v9 }
  0x8a   : > { %1519 = vmatprep.subr.bf16.mxu0 %v1518_v13 }
  0x8d   : > { %1521 = vmatpush3.bf16.msra.mxu0 %v1518_v13 }
  0x8e   : > { %1523 = vmatprep.subr.bf16.mxu0 %v1522_v16 }
  0x91   : > { %1525 = vmatpush3.bf16.msra.mxu0 %v1522_v16 }
  0x92   : > { %1527 = vmatprep.subr.bf16.mxu0 %v1526_v19 }
  0x95   : > { %1529 = vmatpush3.bf16.msra.mxu0 %v1526_v19 }
  0x96   : > { %1531 = vmatprep.subr.bf16.mxu0 %v1530_v22 }
  0x99   : > { %1533 = vmatpush3.bf16.msra.mxu0 %v1530_v22 }
  0x9a   : > { %1535 = vmatprep.subr.bf16.mxu0 %v1534_v25 }
  0x9d   : > { %1537 = vmatpush3.bf16.msra.mxu0 %v1534_v25 }
  0xa0   : > { %1455 = vmatmul.mubr.f32.vlgmr.msra.gmra.mrb[0].mxu0 %v299_v26 }
  0xa1   : > { %1457 = vmatprep.mubr.f32.mxu0 %v300_v27 }
  0xa4   : > { %1458 = vmatmul.mubr.f32.gmra.mrb[2].mxu0 %v301_v28 }
  0xa5   : > { %1460 = vmatprep.mubr.f32.mxu0 %v302_v29 }
  0xa8   : > { %1461 = vmatmul.mubr.f32.gmra.mrb[4].mxu0 %v303_v30 }
  0xa9   : > { %1463 = vmatprep.mubr.f32.mxu0 %v304_v31 }
  0xac   : > { %1464 = vmatmul.mubr.f32.gmra.mrb[6].mxu0 %v305_v32 }
 0x173   : > { %v1456_v34 = vpop.f32.mrb[0].mxu0 }
 0x174   : > { %v395_v35 = vpop.f32.mrb[1].mxu0  ;;  %v401_v40 = vadd.f32 %v1456_v34, %v1374_v33 }
 0x175   : > { %v396_v36 = vadd.f32 %v1374_v33, %v395_v35 }
 0x177   : > { %1467 = vmatpush3.xpose.msra.mxu1 %v396_v36  ;;  %v1459_v37 = vpop.f32.mrb[2].mxu0 }
 0x178   : > { %1471 = vmatprep.subr.mxu1 %v1803_v0  ;;  %v405_v39 = vpop.f32.mrb[3].mxu0  ;;  %v411_v48 = vadd.f32 %v1459_v37, %v1374_v33 }
 0x179   : > { %v406_v41 = vadd.f32 %v1374_v33, %v405_v39 }
 0x17a   : > { %1469 = vmatmul.mubr.f32.vlgmr.msra.gmra.mrb[0].mxu1 %v434_v38 }
 0x17b   : > { %1472 = vmatpush3.xpose.msra.mxu1 %v401_v40  ;;  %1473 = vmatprep.mubr.msk.f32.mxu1 %vm1805_vm1, %v1803_v0  ;;  %v1462_v43 = vpop.f32.mrb[4].mxu0 }
 0x17c   : > { %1476 = vmatprep.subr.mxu1 %v1803_v0  ;;  %v415_v44 = vpop.f32.mrb[5].mxu0  ;;  %v421_v52 = vadd.f32 %v1462_v43, %v1374_v33 }
 0x17d   : > { %v416_v49 = vadd.f32 %v1374_v33, %v415_v44 }
 0x17e   : > { %1474 = vmatmul.mubr.f32.vlgmr.msra.gmra.mrb[2].mxu1 %v435_v42 }
 0x17f   : > { %1477 = vmatpush3.xpose.msra.mxu1 %v406_v41  ;;  %1478 = vmatprep.mubr.msk.f32.mxu1 %vm1805_vm1, %v1803_v0  ;;  %v1465_v46 = vpop.f32.mrb[6].mxu0 }
 0x180   : > { %1481 = vmatprep.subr.mxu1 %v1803_v0  ;;  %v425_v47 = vpop.f32.mrb[7].mxu0  ;;  %v431_v56 = vadd.f32 %v1465_v46, %v1374_v33 }
 0x181   : > { %v426_v53 = vadd.f32 %v1374_v33, %v425_v47 }
 0x182   : > { %1479 = vmatmul.mubr.f32.vlgmr.msra.gmra.mrb[4].mxu1 %v436_v45 }
 0x183   : > { %1482 = vmatpush3.xpose.msra.mxu1 %v411_v48  ;;  %1483 = vmatprep.mubr.msk.f32.mxu1 %vm1805_vm1, %v1803_v0 }
 0x184   : > { %1486 = vmatprep.subr.mxu1 %v1803_v0 }
 0x186   : > { %1484 = vmatmul.mubr.f32.vlgmr.msra.gmra.mrb[6].mxu1 %v437_v50 }
 0x187   : > { %1487 = vmatpush3.xpose.msra.mxu1 %v416_v49  ;;  %1488 = vmatprep.mubr.msk.f32.mxu1 %vm1805_vm1, %v1803_v0 }
 0x188   : > { %1491 = vmatprep.subr.mxu1 %v1803_v0 }
 0x18a   : > { %1489 = vmatmul.mubr.f32.vlgmr.msra.gmra.mrb[8].mxu1 %v438_v51 }
 0x18b   : > { %1492 = vmatpush3.xpose.msra.mxu1 %v421_v52  ;;  %1493 = vmatprep.mubr.msk.f32.mxu1 %vm1805_vm1, %v1803_v0 }
 0x18c   : > { %1496 = vmatprep.subr.mxu1 %v1803_v0 }
 0x18e   : > { %1494 = vmatmul.mubr.f32.vlgmr.msra.gmra.mrb[10].mxu1 %v439_v54 }
 0x18f   : > { %1497 = vmatpush3.xpose.msra.mxu1 %v426_v53  ;;  %1498 = vmatprep.mubr.msk.f32.mxu1 %vm1805_vm1, %v1803_v0 }
 0x190   : > { %1501 = vmatprep.subr.mxu1 %v1803_v0 }
 0x192   : > { %1499 = vmatmul.mubr.f32.vlgmr.msra.gmra.mrb[12].mxu1 %v440_v55 }
 0x193   : > { %1502 = vmatpush3.xpose.msra.mxu1 %v431_v56  ;;  %1503 = vmatprep.mubr.msk.f32.mxu1 %vm1805_vm1, %v1803_v0 }
 0x196   : > { %1504 = vmatmul.mubr.f32.vlgmr.msra.gmra.mrb[14].mxu1 %v441_v57 }
 0x24d   : > { %v2067_v60 = vpop.f32.mrb[0].mxu1 }
 0x24e   : > { %v1470_v61 = vpop.f32.mrb[1].mxu1  ;;  %v1045_v62 = vsel %vm1042_vm2, %v2067_v60, -1e+30 }
 0x24f   : > { %v1053_v63 = vsel %vm1017_vm3, %v1045_v62, -inf }
 0x250   : > { %1054 = vmax.xlane.f32.xlu0 %v1053_v63 }
 0x251   : > { %v2073_v0 = vpop.f32.mrb[2].mxu1 }
 0x252   : > { %v1475_v1 = vpop.f32.mrb[3].mxu1  ;;  %v1046_v2 = vsel %vm1042_vm2, %v2073_v0, -1e+30 }
 0x253   : > { %v1056_v3 = vsel %vm1017_vm3, %v1046_v2, -inf }
 0x254   : > { %1057 = vmax.xlane.f32.xlu0 %v1056_v3 }
 0x255   : > { %v2079_v4 = vpop.f32.mrb[4].mxu1 }
 0x256   : > { %v1480_v5 = vpop.f32.mrb[5].mxu1  ;;  %v1047_v6 = vsel %vm1042_vm2, %v2079_v4, -1e+30 }
 0x257   : > { %v1059_v7 = vsel %vm1017_vm3, %v1047_v6, -inf }
 0x258   : > { %1060 = vmax.xlane.f32.xlu1 %v1059_v7 }
 0x259   : > { %v2085_v8 = vpop.f32.mrb[6].mxu1 }
 0x25a   : > { %v1485_v9 = vpop.f32.mrb[7].mxu1  ;;  %v1048_v10 = vsel %vm1042_vm2, %v2085_v8, -1e+30 }
 0x25b   : > { %v1062_v11 = vsel %vm1017_vm3, %v1048_v10, -inf }
 0x25c   : > { %1063 = vmax.xlane.f32.xlu1 %v1062_v11 }
 0x25d   : > { %v2091_v12 = vpop.f32.mrb[8].mxu1 }
 0x25e   : > { %v1490_v13 = vpop.f32.mrb[9].mxu1  ;;  %v1049_v14 = vsel %vm1042_vm2, %v2091_v12, -1e+30 }
 0x25f   : > { %v1065_v15 = vsel %vm1017_vm3, %v1049_v14, -inf }
 0x260   : > { %1066 = vmax.xlane.f32.xlu0 %v1065_v15 }
 0x261   : > { %v2097_v16 = vpop.f32.mrb[10].mxu1 }
 0x262   : > { %v1495_v17 = vpop.f32.mrb[11].mxu1  ;;  %v1050_v18 = vsel %vm1042_vm2, %v2097_v16, -1e+30 }
 0x263   : > { %v1068_v19 = vsel %vm1017_vm3, %v1050_v18, -inf }
 0x264   : > { %1069 = vmax.xlane.f32.xlu1 %v1068_v19 }
 0x265   : > { %v2103_v20 = vpop.f32.mrb[12].mxu1 }
 0x266   : > { %v1500_v21 = vpop.f32.mrb[13].mxu1  ;;  %v1051_v22 = vsel %vm1042_vm2, %v2103_v20, -1e+30 }
 0x267   : > { %v1071_v23 = vsel %vm1017_vm3, %v1051_v22, -inf }
 0x268   : > { %1072 = vmax.xlane.f32.xlu0 %v1071_v23 }
 0x269   : > { %v2109_v24 = vpop.f32.mrb[14].mxu1 }
 0x26a   : > { %v1505_v25 = vpop.f32.mrb[15].mxu1  ;;  %v1052_v26 = vsel %vm1042_vm2, %v2109_v24, -1e+30 }
 0x26b   : > { %v1074_v27 = vsel %vm1017_vm3, %v1052_v26, -inf }
 0x26c   : > { %1075 = vmax.xlane.f32.xlu1 %v1074_v27 }
 0x2dd   : > { %v2115_v28 = vpop.xlane.xlu0 %1054 }
 0x2de   : > { %v1077_v29 = vsub.f32 %v1045_v62, %v2115_v28 }
 0x2e0   : > { %v1085_v30 = vmul.f32 1.442695, %v1077_v29 }
 0x2e1   : > { %v2118_v31 = vpop.xlane.xlu0 %1057 }
 0x2e2   : > { %1612 = vpow2.f32 %v1085_v30  ;;  %v1078_v32 = vsub.f32 %v1046_v2, %v2118_v31  ;;  %v2145_v2 = vshrl.u32 %v1002_v58, 7 }
 0x2e4   : > { %v1087_v33 = vmul.f32 1.442695, %v1078_v32  ;;  %vm2150_vm4 = vcmp.eq.s32.totalorder %v2145_v2, %v2064_v59 }
 0x2e5   : > { %v2121_v34 = vpop.xlane.xlu1 %1060  ;;  %v1010_v15 = vsel %vm2150_vm4, %v2073_v0, 0.0  ;;  %v1012_v19 = vsel %vm2150_vm4, %v2085_v8, 0.0  ;;  %v1015_v0 = vsel %vm2150_vm4, %v2103_v20, 0.0  ;;  %v1016_v8 = vsel %vm2150_vm4, %v2109_v24, 0.0 }
 0x2e6   : > { %1614 = vpow2.f32 %v1087_v33  ;;  %v1079_v35 = vsub.f32 %v1047_v6, %v2121_v34  ;;  %v1027_v21 = vsel %vm1017_vm3, %v1012_v19, 0.0  ;;  %v1039_v25 = vsel %vm1017_vm3, %v1016_v8, 0.0 }
 0x2e8   : > { %v1089_v36 = vmul.f32 1.442695, %v1079_v35 }
 0x2e9   : > { %v2124_v37 = vpop.xlane.xlu1 %1063 }
 0x2ea   : > { %1616 = vpow2.f32 %v1089_v36  ;;  %v1080_v38 = vsub.f32 %v1048_v10, %v2124_v37  ;;  %v1009_v10 = vsel %vm2150_vm4, %v2067_v60, 0.0  ;;  %v1013_v60 = vsel %vm2150_vm4, %v2091_v12, 0.0 }
 0x2eb   : > { %v1018_v11 = vsel %vm1017_vm3, %v1009_v10, 0.0  ;;  %v1036_v12 = vsel %vm1017_vm3, %v1015_v0, 0.0 }
 0x2ec   : > { %v1613_v39 = vpop.eup %1612  ;;  %v1091_v40 = vmul.f32 1.442695, %v1080_v38 }
 0x2ed   : > { %v2127_v41 = vpop.xlane.xlu0 %1066  ;;  %v1101_v42 = vsel %vm1017_vm3, %v1613_v39, 0.0 }
 0x2ee   : > { %1618 = vpow2.f32 %v1091_v40  ;;  %v1081_v43 = vsub.f32 %v1049_v14, %v2127_v41  ;;  %1102 = vadd.xlane.f32.xlu0 %v1101_v42  ;;  %v1011_v14 = vsel %vm2150_vm4, %v2079_v4, 0.0  ;;  %v1030_v4 = vsel %vm1017_vm3, %v1013_v60, 0.0 }
 0x2ef   : > { %v1024_v17 = vsel %vm1017_vm3, %v1011_v14, 0.0 }
 0x2f0   : > { %v1615_v44 = vpop.eup %1614  ;;  %v1093_v45 = vmul.f32 1.442695, %v1081_v43 }
 0x2f1   : > { %v2131_v46 = vpop.xlane.xlu1 %1069  ;;  %v1104_v47 = vsel %vm1017_vm3, %v1615_v44, 0.0 }
 0x2f2   : > { %1620 = vpow2.f32 %v1093_v45  ;;  %v1082_v48 = vsub.f32 %v1050_v18, %v2131_v46  ;;  %1105 = vadd.xlane.f32.xlu1 %v1104_v47  ;;  %v1021_v18 = vsel %vm1017_vm3, %v1010_v15, 0.0  ;;  %v1174_v47 = vsub.s32 %v2064_v59, %v2145_v2 }
 0x2f3   : > { %v1240_v59 = vstv %s1238_s23 }
 0x2f4   : > { %v1617_v49 = vpop.eup %1616  ;;  %v1095_v50 = vmul.f32 1.442695, %v1082_v48 }
 0x2f5   : > { %v2135_v51 = vpop.xlane.xlu0 %1072  ;;  %v1107_v52 = vsel %vm1017_vm3, %v1617_v49, 0.0 }
 0x2f6   : > { %1622 = vpow2.f32 %v1095_v50  ;;  %v1083_v53 = vsub.f32 %v1051_v22, %v2135_v51  ;;  %1108 = vadd.xlane.f32.xlu0 %v1107_v52  ;;  %v1014_v22 = vsel %vm2150_vm4, %v2097_v16, 0.0 }
 0x2f7   : > { %v1033_v23 = vsel %vm1017_vm3, %v1014_v22, 0.0  ;;  %v1152_v22 = vstv %s1151_s13 }
 0x2f8   : > { %v1619_v54 = vpop.eup %1618  ;;  %v1097_v55 = vmul.f32 1.442695, %v1083_v53  ;;  %vm1153_vm10 = vcmp.lt.s32.totalorder %v2145_v2, %v1152_v22 }
 0x2f9   : > { %v2139_v56 = vpop.xlane.xlu1 %1075  ;;  %v1110_v57 = vsel %vm1017_vm3, %v1619_v54, 0.0  ;;  %vm1154_vm13 = vmand %vm1153_vm10, %vm1042_vm2 }
 0x2fa   : > { %1624 = vpow2.f32 %v1097_v55  ;;  %v1084_v61 = vsub.f32 %v1052_v26, %v2139_v56  ;;  %1111 = vadd.xlane.f32.xlu1 %v1110_v57 }
 0x2fc   : > { %v1621_v62 = vpop.eup %1620  ;;  %v1099_v63 = vmul.f32 1.442695, %v1084_v61 }
 0x2fd   : > { %v1113_v1 = vsel %vm1017_vm3, %v1621_v62, 0.0 }
 0x2fe   : > { %1626 = vpow2.f32 %v1099_v63  ;;  %1114 = vadd.xlane.f32.xlu0 %v1113_v1 }
 0x300   : > { %v1623_v3 = vpop.eup %1622 }
 0x301   : > { %v1116_v5 = vsel %vm1017_vm3, %v1623_v3, 0.0 }
 0x302   : > { %1117 = vadd.xlane.f32.xlu1 %v1116_v5 }
 0x304   : > { %v1625_v7 = vpop.eup %1624 }
 0x305   : > { %v1119_v9 = vsel %vm1017_vm3, %v1625_v7, 0.0 }
 0x306   : > { %1120 = vadd.xlane.f32.xlu0 %v1119_v9 }
 0x308   : > { %v1627_v58 = vpop.eup %1626 }
 0x309   : > { %v1122_v13 = vsel %vm1017_vm3, %v1627_v58, 0.0 }
 0x30a   : > { %1019 = vadd.xlane.f32.xlu0 %v1018_v11  ;;  %1123 = vadd.xlane.f32.xlu1 %v1122_v13 }
 0x30e   : > { %1025 = vadd.xlane.f32.xlu0 %v1024_v17  ;;  %1022 = vadd.xlane.f32.xlu1 %v1021_v18 }
 0x312   : > { %1031 = vadd.xlane.f32.xlu0 %v1030_v4  ;;  %1028 = vadd.xlane.f32.xlu1 %v1027_v21 }
 0x316   : > { %1037 = vadd.xlane.f32.xlu0 %v1036_v12  ;;  %1034 = vadd.xlane.f32.xlu1 %v1033_v23 }
 0x31a   : > { %1040 = vadd.xlane.f32.xlu1 %v1039_v25 }
 0x37b   : > { %v1103_v26 = vpop.xlane.xlu0 %1102 }
 0x37c   : > { %1628 = vlog2.f32 %v1103_v26 }
 0x37f   : > { %v1106_v27 = vpop.xlane.xlu1 %1105 }
 0x380   : > { %1630 = vlog2.f32 %v1106_v27 }
 0x383   : > { %v1109_v20 = vpop.xlane.xlu0 %1108 }
 0x384   : > { %1632 = vlog2.f32 %v1109_v20 }
 0x386   : > { %v1629_v32 = vpop.eup %1628 }
 0x387   : > { %v1112_v16 = vpop.xlane.xlu1 %1111  ;;  %v1126_v24 = vmul.f32 0.6931472, %v1629_v32 }
 0x388   : > { %1634 = vlog2.f32 %v1112_v16 }
 0x389   : > { %v1141_v45 = vadd.f32 %v1126_v24, %v2115_v28 }
 0x38a   : > { %v1631_v33 = vpop.eup %1630 }
 0x38b   : > { %v1115_v29 = vpop.xlane.xlu0 %1114  ;;  %v1128_v39 = vmul.f32 0.6931472, %v1631_v33 }
 0x38c   : > { %1636 = vlog2.f32 %v1115_v29 }
 0x38d   : > { %v1142_v53 = vadd.f32 %v1128_v39, %v2118_v31 }
 0x38e   : > { %v1633_v35 = vpop.eup %1632 }
 0x38f   : > { %v1118_v30 = vpop.xlane.xlu1 %1117  ;;  %v1130_v40 = vmul.f32 0.6931472, %v1633_v35 }
 0x390   : > { %1638 = vlog2.f32 %v1118_v30 }
 0x391   : > { %v1143_v52 = vadd.f32 %v1130_v40, %v2121_v34 }
 0x392   : > { %v1635_v38 = vpop.eup %1634 }
 0x393   : > { %v1121_v36 = vpop.xlane.xlu0 %1120  ;;  %v1132_v48 = vmul.f32 0.6931472, %v1635_v38  ;;  %v1155_v38 = vld [vmem:[#allocation4] sm:$0x1] }
 0x394   : > { %1640 = vlog2.f32 %v1121_v36 }
 0x395   : > { %v1144_v63 = vadd.f32 %v1132_v48, %v2124_v37 }
 0x396   : > { %v1637_v42 = vpop.eup %1636 }
 0x397   : > { %v1020_v43 = vpop.xlane.xlu0 %1019  ;;  %v1124_v44 = vpop.xlane.xlu1 %1123  ;;  %v1134_v49 = vmul.f32 0.6931472, %v1637_v42 }
 0x398   : > { %1642 = vlog2.f32 %v1124_v44  ;;  %v1156_v50 = vsub.f32 %v1020_v43, %v1141_v45 }
 0x399   : > { %v1145_v6 = vadd.f32 %v1134_v49, %v2127_v41  ;;  %1644 = vrcp.f32 %v1240_v59 }
 0x39a   : > { %v1639_v54 = vpop.eup %1638  ;;  %v1175_v3 = vrot.slane %v1156_v50, %v1174_v47 }
 0x39b   : > { %v1026_v55 = vpop.xlane.xlu0 %1025  ;;  %v1023_v57 = vpop.xlane.xlu1 %1022  ;;  %v1136_v1 = vmul.f32 0.6931472, %v1639_v54 }
 0x39c   : > { %v1158_v61 = vsub.f32 %v1026_v55, %v1143_v52  ;;  %v1157_v62 = vsub.f32 %v1023_v57, %v1142_v53 }
 0x39d   : > { %v1146_v15 = vadd.f32 %v1136_v1, %v2131_v46 }
 0x39e   : > { %v1641_v28 = vpop.eup %1640  ;;  %v1179_v5 = vrot.slane %v1157_v62, %v1174_v47  ;;  %v1183_v9 = vrot.slane %v1158_v61, %v1174_v47 }
 0x39f   : > { %v1138_v7 = vmul.f32 0.6931472, %v1641_v28  ;;  %v1032_v34 = vpop.xlane.xlu0 %1031  ;;  %v1029_v10 = vpop.xlane.xlu1 %1028 }
 0x3a0   : > { %v1205_v31 = vsel %vm1204_vm5, %v1179_v5, %v1175_v3  ;;  %v1160_v58 = vsub.f32 %v1032_v34, %v1145_v6  ;;  %v1159_v11 = vsub.f32 %v1029_v10, %v1144_v63 }
 0x3a1   : > { %v1147_v13 = vadd.f32 %v1138_v7, %v2135_v51  ;;  %v1207_v41 = vsel %vm1206_vm6, %v1183_v9, %v1205_v31 }
 0x3a2   : > { %v1643_v37 = vpop.eup %1642  ;;  %v1187_v14 = vrot.slane %v1159_v11, %v1174_v47  ;;  %v1191_v18 = vrot.slane %v1160_v58, %v1174_v47 }
 0x3a3   : > { %v1140_v17 = vmul.f32 0.6931472, %v1643_v37  ;;  %v1038_v60 = vpop.xlane.xlu0 %1037  ;;  %v1035_v19 = vpop.xlane.xlu1 %1034 }
 0x3a4   : > { %v1209_v4 = vsel %vm1208_vm7, %v1187_v14, %v1207_v41  ;;  %v1162_v21 = vsub.f32 %v1038_v60, %v1147_v13  ;;  %v1161_v0 = vsub.f32 %v1035_v19, %v1146_v15  ;;  %v1645_v42 = vpop.eup %1644 }
 0x3a5   : > { %v1148_v12 = vadd.f32 %v1140_v17, %v2139_v56  ;;  %v1211_v46 = vsel %vm1210_vm8, %v1191_v18, %v1209_v4 }
 0x3a6   : > { %v1195_v51 = vrot.slane %v1161_v0, %v1174_v47  ;;  %v1199_v23 = vrot.slane %v1162_v21, %v1174_v47 }
 0x3a7   : > { %v1041_v8 = vpop.xlane.xlu1 %1040 }
 0x3a8   : > { %v1163_v25 = vsub.f32 %v1041_v8, %v1148_v12  ;;  %v1213_v26 = vsel %vm1212_vm9, %v1195_v51, %v1211_v46 }
 0x3a9   : > { %v1215_v20 = vsel %vm1214_vm11, %v1199_v23, %v1213_v26 }
 0x3aa   : > { %v1203_v27 = vrot.slane %v1163_v25, %v1174_v47 }
 0x3ac   : > { %v1217_v16 = vsel %vm1216_vm12, %v1203_v27, %v1215_v20 }
 0x3ad   : > { %v1219_v29 = vsel %vm1154_vm13, %v1217_v16, 0.0 }
 0x3ae   : > { %v1220_v56 = vsel %vm1017_vm3, %v1219_v29, 0.0 }
 0x3af   : > { %1221 = vadd.xlane.f32.xlu0 %v1220_v56 }
 0x43c   : > { %v1222_v30 = vpop.xlane.xlu0 %1221 }
 0x43d   : > { %v1223_v32 = vrot.slane %v1222_v30, 4 }
 0x43f   : > { %v1224_v33 = vadd.f32 %v1223_v32, %v1222_v30 }
 0x441   : > { %v1225_v2 = vrot.slane %v1224_v33, 2 }
 0x443   : > { %v1226_v35 = vadd.f32 %v1225_v2, %v1224_v33 }
 0x445   : > { %v1227_v36 = vrot.slane %v1226_v35, 1 }
 0x447   : > { %v1228_v24 = vadd.f32 %v1227_v36, %v1226_v35 }
 0x449   : > { %1538 = vpush %v1228_v24 }
 0x47a   : > { %s1539_s14 = spop %1538 }
 0x47b   : > { %v1230_v39 = vstv %s1539_s14 }
 0x47c   : > { %v1231_v40 = vadd.f32 %v1230_v39, %v1155_v38 }
 0x47e   : > { %1233 = vst.msk [vmem:[#allocation4] sm:$0x1] %vm249_vm0, %v1231_v40 }
 0x485   : > { %v1239_v43 = vld [vmem:[#allocation4] sm:$0x1] }
 0x486   : > { %v1242_v44 = vmul.f32 %v1645_v42, %v1239_v43 }
 0x488   : > { %1243 = vst.msk [vmem:[%s242_s0] sm:$0x1] %vm249_vm0, %v1242_v44 }
 0x489 PF: > { %s23_s8 = sadd.s32 1, %s1796_s8   ;;  %s2252_s28 = smov %s1780_s29 }
 0x48a   : > { %p20_p9 = scmp.ge.s32.totalorder %s23_s8, 4   ;;  %s2253_s29 = smov %s1784_s30 }
 0x48b   : > { %s2254_s30 = smov %s1934_s17  ;;  %s2255_s6 = smov %s1792_s7 }
 0x48c   : > { %s2256_s7 = smov %s2258_s15  ;;  %22 = sbr.rel (!%p20_p9) target bundleno = 17 (0x11), region = 108 }
 0x493   :  { %1261 = vsyncpa [#allocation8], 1 }
 0x494   :  { %1263 = vsyncpa [#allocation8 + $0x1], 1 }
 0x495   :  { %1264 = vsyncpa [#allocation10], 1 }
 0x496   :  { %1266 = vsyncpa [#allocation10 + $0x1], 1 }
 0x497   :  { %1267 = vsyncmov [#allocation3] }
 0x49a   :  { %s1268_s11 = vpop.sfrf %1267 }
 0x49b   :  { %p1378_p10 = scmp.ne.s32.totalorder %s1268_s11, 0 }
 0x49d   :  { %1272 = shalt.err (%p1378_p10)  }
 0x49e   :  { %1274 = vsyncmov [#allocation3 + $0x1] }
 0x4a1   :  { %s1275_s0 = vpop.sfrf %1274 }
 0x4a2   :  { %p1379_p4 = scmp.ne.s32.totalorder %s1275_s0, 0 }
 0x4a4   :  { %1279 = shalt.err (%p1379_p4)  }

</bundles_post_ra>
